<compile_context>
chip_gen: v6e
topology: v6e:2x2x1
jax: 0.10.0
libtpu: 0.0.40
codegen_flags: <defaults>
</compile_context>

<pallas_src>
import jax
import jax.numpy as jnp
from jax.experimental import pallas as pl
from jax.experimental.pallas import tpu as pltpu


def _fused_encoder_kernel(xcol_ref, w1_ref, w2_ref, b1_ref, b2_ref, o_ref):
    """Whole ConvEncoder forward, no grid (problem is a few KB).

    xcol_ref : (64, M)  bf16  im2col of input; row = (kh*4+kw)*C + c,
                              col m = n*64 + oh*8 + ow            (conv1 RHS)
    w1_ref   : (8, 64)  bf16  conv1 weights, [cout, tap*C + cin]
    w2_ref   : (32,128) bf16  head  weights, [cout, tap*8 + cin]
    b1_ref   : (8, 1)   f32
    b2_ref   : (32, 1)  f32
    o_ref    : (32, M)  f32   transposed head output (lane-dense)
    """
    M = xcol_ref.shape[1]

    # ---- 'input' block: Conv2d(4->8, k=4, s=2, p=1) + LeakyReLU(0.2)
    # One MXU op (K = 16 taps * 4 cin = 64), transposed orientation: the
    # intermediate h^T is a single lane-dense f32 vreg (8, 128) for N=2.
    hT = jnp.dot(w1_ref[...], xcol_ref[...],
                 preferred_element_type=jnp.float32) + b1_ref[...]
    hT = jnp.where(hT > 0, hT, 0.2 * hT)                       # LeakyReLU(0.2)

    # ---- 'head': Conv2d(8->32, k=4, s=1, p=0) as ONE K=128 matmul.
    # Tap (kh,kw) needs h at (oh+kh, ow+kw) == column m + (kh*8 + kw) of h^T,
    # i.e. a lane roll.  pltpu.roll follows jnp.roll semantics
    # (result[:, j] = x[:, (j - shift) % M]), so shift = M - d yields
    # x[:, (j + d) % M].  Wrapped lanes only land in columns with oh>=5 or
    # ow>=5, which the wrapper crops away — this trick requires OH == 8, a 4x4
    # head kernel and the 5x5 crop (asserted in the wrapper).
    taps = []
    for kh in range(4):
        for kw in range(4):
            d = kh * 8 + kw
            taps.append(hT if d == 0 else pltpu.roll(hT, M - d, axis=1))
    hbig = jnp.concatenate(taps, axis=0).astype(jnp.bfloat16)   # (128, M)

    o_ref[...] = jnp.dot(w2_ref[...], hbig,
                         preferred_element_type=jnp.float32) + b2_ref[...]


@jax.jit
def conv_encoder_forward(x_nchw, params):
    """ConvEncoder.forward for img_sz=(16,16), use_skips=False, goal_cond=False."""
    N, C, H, W = x_nchw.shape
    OH = (H + 2 - 4) // 2 + 1          # 8  (conv1 output spatial size)
    OH2 = OH - 3                       # 5  (head output spatial size)
    M = N * OH * OH                    # 128 -> lane-dense column axis
    assert OH == 8 and OH2 == 5, "lane-roll head trick assumes OH==8 and 5x5 crop"

    # -- input plumbing: ONE XLA fusion building the lane-dense bf16 im2col slab.
    #    xcol[(kh*4+kw)*C + c, n*64 + oh*8 + ow] = x_pad[n, c, 2*oh+kh, 2*ow+kw]
    xp = jnp.pad(x_nchw, ((0, 0), (0, 0), (1, 1), (1, 1)))              # (N,C,18,18)
    cols = [xp[:, :, kh:kh + 2 * OH:2, kw:kw + 2 * OH:2]                # (N,C,8,8)
            for kh in range(4) for kw in range(4)]
    xcol = (jnp.stack(cols, axis=0)                                     # (16,N,C,8,8)
            .transpose(0, 2, 1, 3, 4)                                   # (16,C,N,8,8)
            .reshape(16 * C, M)
            .astype(jnp.bfloat16))

    # -- weight/bias layout (in a real model this is done once at load time).
    w1 = params["w_in"].transpose(3, 0, 1, 2).reshape(8, 16 * C).astype(jnp.bfloat16)
    w2 = params["w_head"].transpose(3, 0, 1, 2).reshape(32, 16 * 8).astype(jnp.bfloat16)
    b1 = params["b_in"].reshape(8, 1).astype(jnp.float32)
    b2 = params["b_head"].reshape(32, 1).astype(jnp.float32)

    outT = pl.pallas_call(
        _fused_encoder_kernel,
        out_shape=jax.ShapeDtypeStruct((32, M), jnp.float32),
        in_specs=[
            pl.BlockSpec((16 * C, M), lambda: (0, 0)),
            pl.BlockSpec((8, 16 * C), lambda: (0, 0)),
            pl.BlockSpec((32, 16 * 8), lambda: (0, 0)),
            pl.BlockSpec((8, 1), lambda: (0, 0)),
            pl.BlockSpec((32, 1), lambda: (0, 0)),
        ],
        out_specs=pl.BlockSpec((32, M), lambda: (0, 0)),
        # No grid: the whole problem fits one invocation -> two MXU ops + epilogue.
        # TODO(synk): for real batch sizes add a grid over the M (=N*8*8) column
        # axis with dimension_semantics=("parallel",): 256-lane M-tiles sized for
        # v6e/v7x (2x256 MXU; 2 TCs and only 64 MiB VMEM on v7x), 128-lane tiles
        # and an explicit vmem_limit_bytes on v5e (16 MiB scoped default).
    )(xcol, w1, w2, b1, b2)

    # -- output plumbing: (32, N*8*8) lane-dense slab -> (N, 32, 5, 5)
    out = outT.reshape(32, N, OH, OH)[:, :, :OH2, :OH2]
    return jnp.transpose(out, (1, 0, 2, 3))
    # TODO(synk): use_skips=True path (GetIntermediatesSequential returning
    # intermediate activations) not exercised in this config.


def _reference_forward(x_nchw, params):
    """Pure-JAX reference (lax.conv) with the same bf16 operand rounding."""
    x = jnp.transpose(x_nchw, (0, 2, 3, 1)).astype(jnp.bfloat16)
    w1 = params["w_in"].astype(jnp.bfloat16)
    w2 = params["w_head"].astype(jnp.bfloat16)
    y = jax.lax.conv_general_dilated(
        x, w1, (2, 2), ((1, 1), (1, 1)),
        dimension_numbers=("NHWC", "HWIO", "NHWC"),
        preferred_element_type=jnp.float32)
    y = y + params["b_in"].astype(jnp.float32)
    y = jnp.where(y > 0, y, 0.2 * y).astype(jnp.bfloat16)
    y = jax.lax.conv_general_dilated(
        y, w2, (1, 1), ((0, 0), (0, 0)),
        dimension_numbers=("NHWC", "HWIO", "NHWC"),
        preferred_element_type=jnp.float32)
    y = y + params["b_head"].astype(jnp.float32)
    return jnp.transpose(y, (0, 3, 1, 2))


if __name__ == "__main__":
    N, C, H, W = 2, 4, 16, 16
    ngf, nz_enc = 8, 32

    key = jax.random.PRNGKey(0)
    kx, kw1, kb1, kw2, kb2 = jax.random.split(key, 5)

    x = jax.random.normal(kx, (N, C, H, W), dtype=jnp.float32)
    params = {
        # weights stored HWIO; the equivalent PyTorch Conv2d weight is OIHW transposed.
        "w_in": 0.1 * jax.random.normal(kw1, (4, 4, C, ngf), dtype=jnp.float32),
        "b_in": 0.01 * jax.random.normal(kb1, (ngf,), dtype=jnp.float32),
        "w_head": 0.1 * jax.random.normal(kw2, (4, 4, ngf, nz_enc), dtype=jnp.float32),
        "b_head": 0.01 * jax.random.normal(kb2, (nz_enc,), dtype=jnp.float32),
    }

    out = jax.block_until_ready(conv_encoder_forward(x, params))
    assert out.shape == (N, nz_enc, 5, 5), out.shape

    ref = jax.block_until_ready(_reference_forward(x, params))
    assert jnp.allclose(out, ref, atol=2e-3, rtol=2e-3), \
        float(jnp.max(jnp.abs(out - ref)))

    print("KERNEL_OK")
</pallas_src>

<mosaic_0001>
module attributes {stable_mosaic.version = 11 : i64} {
  func.func @_fused_encoder_kernel(%arg0: memref<64x128xbf16, #tpu.memory_space<vmem>>, %arg1: memref<8x64xbf16, #tpu.memory_space<vmem>>, %arg2: memref<32x128xbf16, #tpu.memory_space<vmem>>, %arg3: memref<8x1xf32, #tpu.memory_space<vmem>>, %arg4: memref<32x1xf32, #tpu.memory_space<vmem>>, %arg5: memref<32x128xf32, #tpu.memory_space<vmem>>) attributes {dimension_semantics = [], scalar_prefetch = 0 : i64, scratch_operands = 0 : i64, tpu.core_type = #tpu.core_type<tc>} {
    %c0 = arith.constant 0 : index
    %c0_0 = arith.constant 0 : index
    %0 = vector.load %arg1[%c0, %c0_0] : memref<8x64xbf16, #tpu.memory_space<vmem>>, vector<8x64xbf16>
    %c0_1 = arith.constant 0 : index
    %c0_2 = arith.constant 0 : index
    %1 = vector.load %arg0[%c0_1, %c0_2] : memref<64x128xbf16, #tpu.memory_space<vmem>>, vector<64x128xbf16>
    %cst = arith.constant dense<0.000000e+00> : vector<8x128xf32>
    %2 = tpu.matmul %0, %1, %cst {dimension_numbers = #tpu.dot_dimension_numbers<[1], [0], [0], [1], [0, 0, 1, 1], [], []>} : vector<8x64xbf16>, vector<64x128xbf16>, vector<8x128xf32> -> vector<8x128xf32>
    %c0_3 = arith.constant 0 : index
    %c0_4 = arith.constant 0 : index
    %3 = vector.load %arg3[%c0_3, %c0_4] : memref<8x1xf32, #tpu.memory_space<vmem>>, vector<8x1xf32>
    %4 = vector.broadcast %3 : vector<8x1xf32> to vector<8x128xf32>
    %5 = arith.addf %2, %4 : vector<8x128xf32>
    %cst_5 = arith.constant 0.000000e+00 : f32
    %6 = vector.broadcast %cst_5 : f32 to vector<8x128xf32>
    %7 = arith.cmpf ogt, %5, %6 : vector<8x128xf32>
    %cst_6 = arith.constant 2.000000e-01 : f32
    %8 = vector.broadcast %cst_6 : f32 to vector<8x128xf32>
    %9 = arith.mulf %8, %5 : vector<8x128xf32>
    %10 = arith.select %7, %5, %9 : vector<8x128xi1>, vector<8x128xf32>
    %c127_i32 = arith.constant 127 : i32
    %11 = tpu.dynamic_rotate %10 by %c127_i32 dim 1 : vector<8x128xf32>, i32 -> vector<8x128xf32>
    %c126_i32 = arith.constant 126 : i32
    %12 = tpu.dynamic_rotate %10 by %c126_i32 dim 1 : vector<8x128xf32>, i32 -> vector<8x128xf32>
    %c125_i32 = arith.constant 125 : i32
    %13 = tpu.dynamic_rotate %10 by %c125_i32 dim 1 : vector<8x128xf32>, i32 -> vector<8x128xf32>
    %c120_i32 = arith.constant 120 : i32
    %14 = tpu.dynamic_rotate %10 by %c120_i32 dim 1 : vector<8x128xf32>, i32 -> vector<8x128xf32>
    %c119_i32 = arith.constant 119 : i32
    %15 = tpu.dynamic_rotate %10 by %c119_i32 dim 1 : vector<8x128xf32>, i32 -> vector<8x128xf32>
    %c118_i32 = arith.constant 118 : i32
    %16 = tpu.dynamic_rotate %10 by %c118_i32 dim 1 : vector<8x128xf32>, i32 -> vector<8x128xf32>
    %c117_i32 = arith.constant 117 : i32
    %17 = tpu.dynamic_rotate %10 by %c117_i32 dim 1 : vector<8x128xf32>, i32 -> vector<8x128xf32>
    %c112_i32 = arith.constant 112 : i32
    %18 = tpu.dynamic_rotate %10 by %c112_i32 dim 1 : vector<8x128xf32>, i32 -> vector<8x128xf32>
    %c111_i32 = arith.constant 111 : i32
    %19 = tpu.dynamic_rotate %10 by %c111_i32 dim 1 : vector<8x128xf32>, i32 -> vector<8x128xf32>
    %c110_i32 = arith.constant 110 : i32
    %20 = tpu.dynamic_rotate %10 by %c110_i32 dim 1 : vector<8x128xf32>, i32 -> vector<8x128xf32>
    %c109_i32 = arith.constant 109 : i32
    %21 = tpu.dynamic_rotate %10 by %c109_i32 dim 1 : vector<8x128xf32>, i32 -> vector<8x128xf32>
    %c104_i32 = arith.constant 104 : i32
    %22 = tpu.dynamic_rotate %10 by %c104_i32 dim 1 : vector<8x128xf32>, i32 -> vector<8x128xf32>
    %c103_i32 = arith.constant 103 : i32
    %23 = tpu.dynamic_rotate %10 by %c103_i32 dim 1 : vector<8x128xf32>, i32 -> vector<8x128xf32>
    %c102_i32 = arith.constant 102 : i32
    %24 = tpu.dynamic_rotate %10 by %c102_i32 dim 1 : vector<8x128xf32>, i32 -> vector<8x128xf32>
    %c101_i32 = arith.constant 101 : i32
    %25 = tpu.dynamic_rotate %10 by %c101_i32 dim 1 : vector<8x128xf32>, i32 -> vector<8x128xf32>
    %26 = tpu.concatenate %10, %11, %12, %13, %14, %15, %16, %17, %18, %19, %20, %21, %22, %23, %24, %25 in 0 : vector<8x128xf32>, vector<8x128xf32>, vector<8x128xf32>, vector<8x128xf32>, vector<8x128xf32>, vector<8x128xf32>, vector<8x128xf32>, vector<8x128xf32>, vector<8x128xf32>, vector<8x128xf32>, vector<8x128xf32>, vector<8x128xf32>, vector<8x128xf32>, vector<8x128xf32>, vector<8x128xf32>, vector<8x128xf32> -> vector<128x128xf32>
    %27 = arith.truncf %26 : vector<128x128xf32> to vector<128x128xbf16>
    %c0_7 = arith.constant 0 : index
    %c0_8 = arith.constant 0 : index
    %28 = vector.load %arg2[%c0_7, %c0_8] : memref<32x128xbf16, #tpu.memory_space<vmem>>, vector<32x128xbf16>
    %cst_9 = arith.constant dense<0.000000e+00> : vector<32x128xf32>
    %29 = tpu.matmul %28, %27, %cst_9 {dimension_numbers = #tpu.dot_dimension_numbers<[1], [0], [0], [1], [0, 0, 1, 1], [], []>} : vector<32x128xbf16>, vector<128x128xbf16>, vector<32x128xf32> -> vector<32x128xf32>
    %c0_10 = arith.constant 0 : index
    %c0_11 = arith.constant 0 : index
    %30 = vector.load %arg4[%c0_10, %c0_11] : memref<32x1xf32, #tpu.memory_space<vmem>>, vector<32x1xf32>
    %31 = vector.broadcast %30 : vector<32x1xf32> to vector<32x128xf32>
    %32 = arith.addf %29, %31 : vector<32x128xf32>
    %c0_12 = arith.constant 0 : index
    %c0_13 = arith.constant 0 : index
    %33 = vector.load %arg5[%c0_12, %c0_13] : memref<32x128xf32, #tpu.memory_space<vmem>>, vector<32x128xf32>
    tpu.vector_store %arg5[%c0_12, %c0_13], %32 {strides = array<i32>} : memref<32x128xf32, #tpu.memory_space<vmem>>, vector<32x128xf32>,
    return
  }
}

</mosaic_0001>

<bundles_post_ra>
// kernel: conv_encoder_forward.1
= control target key start
LH: loop header
LB: loop body
LE: loop exit
PB: predicated region body
PF: predicated region fallthrough
CT: control target
= control target key end

     0   :  { %v322_v0 = vmov 0.0   ;;  %vm323_vm0 = vmmov 0   ;;  %v324_v2 = vmov 0   ;;  %vm60_vm1 = vcmask 523264   ;;  %s327_s30 = smov 104   ;;  %s329_s6 = smov 110   ;;  %s436_s0 = inlined_call_operand.vmem [shape: bf16[64,128], index: 0, kind: input, shape index: {}]   ;;  %s437_s3 = inlined_call_operand.vmem [shape: f32[8,1], index: 3, kind: input, shape index: {}]   ;;  %s438_s1 = inlined_call_operand.vmem [shape: bf16[8,64], index: 1, kind: input, shape index: {}]   ;;  %s439_s2 = inlined_call_operand.vmem [shape: bf16[32,128], index: 2, kind: input, shape index: {}]   ;;  %s440_s4 = inlined_call_operand.vmem [shape: f32[32,1], index: 4, kind: input, shape index: {}]   ;;  %s441_s5 = inlined_call_operand.vmem [shape: f32[32,128], index: 5, kind: output, shape index: {}]  }
   0x1   :  { %264 = vmatprep.subr.bf16.mxu0 %v322_v0  ;;  %v316_v1 = vld [vmem:[%s436_s0 + $0x18] sm:$0xff]   ;;  %272 = vmatprep.mubr.msk.bf16.mxu0 %vm323_vm0, %v322_v0  ;;  %v317_v3 = vld [vmem:[%s436_s0 + $0x10] sm:$0xff]   ;;  %v30_v4 = vld [vmem:[%s437_s3] sm:$0xff]  ;;  %s325_s3 = smov 101   ;;  %s330_s7 = smov 109  }
   0x2   :  { %314 = vset.pattern.permute.xlu0 %v324_v2  ;;  %315 = vset.pattern.permute.xlu1 %v324_v2  ;;  %v318_v5 = vld [vmem:[%s436_s0 + $0x8] sm:$0xff]   ;;  %v319_v6 = vld [vmem:[%s436_s0] sm:$0xff]   ;;  %s326_s0 = smov 102   ;;  %s331_s8 = smov 112   ;;  %v151_v18 = vld [vmem:[%s440_s4 + $0x10] sm:$0xff] }
   0x3   :  { %265 = vmatpush3.bf16.msra.mxu0 %v316_v1  ;;  %33 = vperm.xlu0 %314, %v30_v4   ;;  %v21_v7 = vld [vmem:[%s438_s1] sm:$0xf]  ;;  %s328_s1 = smov 103   ;;  %s332_s9 = smov 111   ;;  %v150_v19 = vld [vmem:[%s440_s4 + $0x8] sm:$0xff]  ;;  %v152_v20 = vld [vmem:[%s440_s4 + $0x18] sm:$0xff] }
   0x4   :  { %266 = vmatprep.subr.bf16.mxu0 %v322_v0  ;;  %s333_s10 = smov 118   ;;  %s334_s11 = smov 117   ;;  %v320_v16 = vld [vmem:[%s439_s2] sm:$0xff]   ;;  %v321_v44 = vld [vmem:[%s439_s2 + $0x8] sm:$0xff]  }
   0x5   :  { %s335_s14 = smov 120   ;;  %s336_s15 = smov 119   ;;  %292 = vmatprep.mubr.bf16.mxu1 %v320_v16  ;;  %v149_v17 = vld [vmem:[%s440_s4] sm:$0xff] }
   0x6   :  { %s337_s16 = smov 126   ;;  %s338_s17 = smov 125  }
   0x7   :  { %267 = vmatpush3.bf16.msra.mxu0 %v317_v3  ;;  %s339_s20 = smov 127  }
   0x8   :  { %268 = vmatprep.subr.bf16.mxu0 %v322_v0 }
   0xb   :  { %269 = vmatpush3.bf16.msra.mxu0 %v318_v5 }
   0xc   :  { %270 = vmatprep.subr.bf16.mxu0 %v322_v0 }
   0xf   :  { %271 = vmatpush3.bf16.msra.mxu0 %v319_v6 }
  0x12   :  { %273 = vmatmul.mubr.msk.bf16.vlgmr.msra.gmra.mxu0 %vm60_vm1, %v21_v7 }
  0x7e   :  { %v34_v8 = vpop.permute.xlu0 %33 }
  0xd2   :  { %v98_v9 = vpop.f32.mrf.mxu0 }
  0xd3   :  { %v99_v10 = vadd.f32 %v98_v9, %v34_v8 }
  0xd4   :  { %v274_v11 = vpop.f32.mrf.mxu0 }
  0xd5   :  { %vm104_vm2 = vcmp.gt.f32.partialorder %v99_v10, 0.0  ;;  %v105_v12 = vmul.f32 0.2, %v99_v10 }
  0xd6   :  { %v101_v13 = vpop.f32.mrf.mxu0 }
  0xd7   :  { %v388_v14 = vsel %vm104_vm2, %v99_v10, %v105_v12 }
  0xd8   :  { %135 = vrot.lane.b32.xlu1 %v388_v14, %s325_s3  ;;  %133 = vrot.lane.b32.xlu0 %v388_v14, %s326_s0  ;;  %v275_v15 = vpop.f32.mrf.mxu0 }
  0xdc   :  { %129 = vrot.lane.b32.xlu1 %v388_v14, %s327_s30  ;;  %131 = vrot.lane.b32.xlu0 %v388_v14, %s328_s1 }
  0xe0   :  { %125 = vrot.lane.b32.xlu1 %v388_v14, %s329_s6  ;;  %127 = vrot.lane.b32.xlu0 %v388_v14, %s330_s7 }
  0xe4   :  { %121 = vrot.lane.b32.xlu1 %v388_v14, %s331_s8  ;;  %123 = vrot.lane.b32.xlu0 %v388_v14, %s332_s9 }
  0xe8   :  { %117 = vrot.lane.b32.xlu1 %v388_v14, %s333_s10  ;;  %119 = vrot.lane.b32.xlu0 %v388_v14, %s334_s11 }
  0xec   :  { %113 = vrot.lane.b32.xlu1 %v388_v14, %s335_s14  ;;  %115 = vrot.lane.b32.xlu0 %v388_v14, %s336_s15 }
  0xf0   :  { %109 = vrot.lane.b32.xlu1 %v388_v14, %s337_s16  ;;  %111 = vrot.lane.b32.xlu0 %v388_v14, %s338_s17 }
  0xf4   :  { %107 = vrot.lane.b32.xlu1 %v388_v14, %s339_s20  ;;  %155 = vperm.xlu0 %314, %v149_v17  }
  0xf8   :  { %165 = vperm.xlu0 %314, %v151_v18   ;;  %160 = vperm.xlu1 %315, %v150_v19  }
  0xfc   :  { %170 = vperm.xlu1 %315, %v152_v20  }
 0x14a   :  { %v136_v21 = vpop.permute.xlu1 %135  ;;  %v134_v22 = vpop.permute.xlu0 %133 }
 0x14b   :  { %v144_v23 = vpack.c.bf16 %v136_v21, %v134_v22 }
 0x14d   :  { %276 = vmatprep.subr.bf16.mxu1 %v144_v23 }
 0x14e   :  { %v130_v24 = vpop.permute.xlu1 %129  ;;  %277 = vmatpush3.bf16.msra.mxu1 %v144_v23  ;;  %v132_v25 = vpop.permute.xlu0 %131 }
 0x14f   :  { %v143_v26 = vpack.c.bf16 %v132_v25, %v130_v24 }
 0x151   :  { %278 = vmatprep.subr.bf16.mxu1 %v143_v26 }
 0x152   :  { %v126_v27 = vpop.permute.xlu1 %125  ;;  %279 = vmatpush3.bf16.msra.mxu1 %v143_v26  ;;  %v128_v28 = vpop.permute.xlu0 %127 }
 0x153   :  { %v142_v29 = vpack.c.bf16 %v128_v28, %v126_v27 }
 0x155   :  { %280 = vmatprep.subr.bf16.mxu1 %v142_v29 }
 0x156   :  { %v122_v30 = vpop.permute.xlu1 %121  ;;  %281 = vmatpush3.bf16.msra.mxu1 %v142_v29  ;;  %v124_v31 = vpop.permute.xlu0 %123 }
 0x157   :  { %v141_v32 = vpack.c.bf16 %v124_v31, %v122_v30 }
 0x159   :  { %282 = vmatprep.subr.bf16.mxu1 %v141_v32 }
 0x15a   :  { %v118_v33 = vpop.permute.xlu1 %117  ;;  %283 = vmatpush3.bf16.msra.mxu1 %v141_v32  ;;  %v120_v34 = vpop.permute.xlu0 %119 }
 0x15b   :  { %v140_v35 = vpack.c.bf16 %v120_v34, %v118_v33 }
 0x15d   :  { %284 = vmatprep.subr.bf16.mxu1 %v140_v35 }
 0x15e   :  { %v114_v36 = vpop.permute.xlu1 %113  ;;  %285 = vmatpush3.bf16.msra.mxu1 %v140_v35  ;;  %v116_v37 = vpop.permute.xlu0 %115 }
 0x15f   :  { %v139_v38 = vpack.c.bf16 %v116_v37, %v114_v36 }
 0x161   :  { %286 = vmatprep.subr.bf16.mxu1 %v139_v38 }
 0x162   :  { %v110_v39 = vpop.permute.xlu1 %109  ;;  %287 = vmatpush3.bf16.msra.mxu1 %v139_v38  ;;  %v112_v40 = vpop.permute.xlu0 %111 }
 0x163   :  { %v138_v41 = vpack.c.bf16 %v112_v40, %v110_v39 }
 0x165   :  { %288 = vmatprep.subr.bf16.mxu1 %v138_v41 }
 0x166   :  { %v108_v42 = vpop.permute.xlu1 %107  ;;  %289 = vmatpush3.bf16.msra.mxu1 %v138_v41 }
 0x167   :  { %v137_v43 = vpack.c.bf16 %v108_v42, %v388_v14 }
 0x169   :  { %290 = vmatprep.subr.bf16.mxu1 %v137_v43 }
 0x16a   :  { %291 = vmatpush3.bf16.msra.mxu1 %v137_v43 }
 0x16d   :  { %293 = vmatmul.mubr.bf16.vlgmr.msra.gmra.mxu1 %v321_v44 }
 0x16f   :  { %v156_v45 = vpop.permute.xlu0 %155 }
 0x173   :  { %v161_v46 = vpop.permute.xlu1 %160  ;;  %v166_v47 = vpop.permute.xlu0 %165 }
 0x177   :  { %v171_v52 = vpop.permute.xlu1 %170 }
 0x22d   :  { %v294_v48 = vpop.f32.mrf.mxu1 }
 0x22e   :  { %v228_v49 = vadd.f32 %v294_v48, %v166_v47 }
 0x22f   :  { %v219_v50 = vpop.f32.mrf.mxu1 }
 0x230   :  { %236 = vst [vmem:[%s441_s5 + $0x10] sm:$0xff] %v228_v49  ;;  %v220_v51 = vadd.f32 %v219_v50, %v156_v45 }
 0x231   :  { %v295_v53 = vpop.f32.mrf.mxu1 }
 0x232   :  { %234 = vst [vmem:[%s441_s5] sm:$0xff] %v220_v51  ;;  %v231_v54 = vadd.f32 %v295_v53, %v171_v52 }
 0x233   :  { %v222_v55 = vpop.f32.mrf.mxu1 }
 0x234   :  { %237 = vst [vmem:[%s441_s5 + $0x18] sm:$0xff] %v231_v54  ;;  %v223_v56 = vadd.f32 %v222_v55, %v161_v46 }
 0x236   :  { %235 = vst [vmem:[%s441_s5 + $0x8] sm:$0xff] %v223_v56 }

</bundles_post_ra>
